<compile_context>
chip_gen: v7x
topology: tpu7x:2x2x1
jax: 0.10.0
libtpu: 0.0.40
codegen_flags: <defaults>
</compile_context>

<pallas_src>
import jax
import jax.numpy as jnp
import numpy as np
from jax import lax
from jax.experimental import pallas as pl
from jax.experimental.pallas import tpu as pltpu


# ----------------------------------------------------------------------------
# Host-side constant construction (run once at parameter-setup time)
# ----------------------------------------------------------------------------
def _interp_matrix_np(n_in, n_out):
    """Bilinear 1-D interpolation matrix, align_corners=True: out = A @ in."""
    A = np.zeros((n_out, n_in), np.float64)
    if n_in == 1:
        A[:, 0] = 1.0
        return A
    src = np.arange(n_out) * (n_in - 1) / (n_out - 1)
    i0 = np.clip(np.floor(src).astype(np.int64), 0, n_in - 2)
    frac = src - i0
    A[np.arange(n_out), i0] += 1.0 - frac
    A[np.arange(n_out), i0 + 1] += frac
    return A


def _band_matrix_np(w_kw, H):
    """Vertical-tap conv weights folded into a (Cout*H, Cin*H) banded matrix.

    w_kw: (Cout, Cin, 3) folded weights for one horizontal tap kw.
    A[co*H + h, ci*H + h'] = sum_kh w_kw[co, ci, kh] * [h' == h + kh - 1, 0<=h'<H]
    (the zero-padding in H is simply the absence of out-of-range columns).
    """
    coutc, cinc, _ = w_kw.shape
    A = np.zeros((coutc * H, cinc * H), np.float32)
    rows = np.arange(coutc)[:, None] * H
    cols = np.arange(cinc)[None, :] * H
    for kh in range(3):
        dh = kh - 1
        for h in range(H):
            hp = h + dh
            if 0 <= hp < H:
                A[rows + h, cols + hp] += w_kw[:, :, kh]
    return A


def _col_shift_matrix_np(W, kw):
    """(W, W) 0/1 matrix M with (G @ M)[:, w] = G[:, w + kw - 1] (0 out of range)."""
    M = np.zeros((W, W), np.float32)
    for w in range(W):
        v = w + kw - 1
        if 0 <= v < W:
            M[v, w] = 1.0
    return M


def prepare_constants(p1, p2, H, W):
    """Build all kernel constants once (BN folded, taps folded into weights)."""
    w1 = np.asarray(p1['w_folded'])          # (Cmid, Cin, 3, 3)
    w2 = np.asarray(p2['w_folded'])          # (Cout, Cmid, 3, 3)
    Cout = w2.shape[0]

    # Per-conv: [A_kw0 | A_kw1 | A_kw2] along columns (matches kernel K-stack).
    A1 = np.concatenate([_band_matrix_np(w1[:, :, :, kw], H) for kw in range(3)],
                        axis=1).astype(np.float32)            # (Cmid*H, 3*Cin*H)
    A2 = np.concatenate([_band_matrix_np(w2[:, :, :, kw], H) for kw in range(3)],
                        axis=1).astype(np.float32)            # (Cout*H, 3*Cmid*H)
    b1 = np.repeat(np.asarray(p1['bias']), H)[:, None].astype(np.float32)
    b2 = np.repeat(np.asarray(p2['bias']), H)[:, None].astype(np.float32)

    Mneg = _col_shift_matrix_np(W, 0)                          # kw = 0 (dw = -1)
    Mpos = _col_shift_matrix_np(W, 2)                          # kw = 2 (dw = +1)

    AwT = _interp_matrix_np(W, 2 * W).T.astype(np.float32)     # (W, 2W)
    Ah = _interp_matrix_np(H, 2 * H).astype(np.float32)        # (2H, H)
    Bup = np.kron(np.eye(Cout, dtype=np.float32), Ah)          # (Cout*2H, Cout*H)

    arrs = dict(a1=A1, b1=b1, a2=A2, b2=b2, mneg=Mneg, mpos=Mpos, awt=AwT, bup=Bup)
    return {k: jnp.asarray(v) for k, v in arrs.items()}


# ----------------------------------------------------------------------------
# Fused kernel: concat + conv1(BN,ReLU) + conv2(BN,ReLU) + bilinear x2
# ----------------------------------------------------------------------------
def _up_fused_kernel(x1_ref, x2_ref, a1_ref, b1_ref, a2_ref, b2_ref,
                     mneg_ref, mpos_ref, awt_ref, bup_ref, o_ref):
    # x1_ref : (1, C1*H, W)   x2_ref : (1, C2*H, W)      (C*H rows, W lanes)
    # a1_ref : (Cmid*H, 3*Cin*H)   b1_ref : (Cmid*H, 1)
    # a2_ref : (Cout*H, 3*Cmid*H)  b2_ref : (Cout*H, 1)
    # mneg/mpos : (W, W) column-shift matrices for the horizontal taps
    # awt_ref: (W, 2W)  bup_ref: (Cout*2H, Cout*H)
    # o_ref  : (1, Cout*2H, 2W)
    mneg = mneg_ref[...]
    mpos = mpos_ref[...]

    def conv_bn_relu(xin, a_ref, b_ref):
        # horizontal taps: two tiny K=W dots; vertical taps live inside a_ref
        xm = jnp.dot(xin, mneg, preferred_element_type=jnp.float32)
        xp = jnp.dot(xin, mpos, preferred_element_type=jnp.float32)
        xs = jnp.concatenate([xm, xin, xp], axis=0)            # (3*Cin*H, W)
        y = jnp.dot(a_ref[...], xs, preferred_element_type=jnp.float32)
        return jnp.maximum(y + b_ref[...], 0.0)

    # channel concat of torch.cat([x2, x1], dim=1) == row concat in (C*H, W) form
    x = jnp.concatenate([x2_ref[0], x1_ref[0]], axis=0)        # (Cin*H, W)

    h1 = conv_bn_relu(x, a1_ref, b1_ref)                       # (Cmid*H, W)
    h2 = conv_bn_relu(h1, a2_ref, b2_ref)                      # (Cout*H, W)

    # separable bilinear x2 (align_corners=True): W-interp then H-interp
    uw = jnp.dot(h2, awt_ref[...], preferred_element_type=jnp.float32)   # (Cout*H, 2W)
    o_ref[0] = jnp.dot(bup_ref[...], uw, preferred_element_type=jnp.float32)


@jax.jit
def up_forward(x1, x2, consts):
    """x1, x2: NCHW (N, C_half, H, W).  Returns NCHW (N, Cout, 2H, 2W)."""
    N, C1, H, W = x1.shape
    C2 = x2.shape[1]
    Cout2H = consts['bup'].shape[0]
    Cout = Cout2H // (2 * H)

    # Free row-major reshapes (no data movement).
    x1r = x1.reshape(N, C1 * H, W)
    x2r = x2.reshape(N, C2 * H, W)

    out = pl.pallas_call(
        _up_fused_kernel,
        out_shape=jax.ShapeDtypeStruct((N, Cout2H, 2 * W), jnp.float32),
        grid=(N,),
        in_specs=[
            pl.BlockSpec((1, C1 * H, W), lambda n: (n, 0, 0)),
            pl.BlockSpec((1, C2 * H, W), lambda n: (n, 0, 0)),
            pl.BlockSpec(consts['a1'].shape, lambda n: (0, 0)),
            pl.BlockSpec(consts['b1'].shape, lambda n: (0, 0)),
            pl.BlockSpec(consts['a2'].shape, lambda n: (0, 0)),
            pl.BlockSpec(consts['b2'].shape, lambda n: (0, 0)),
            pl.BlockSpec((W, W), lambda n: (0, 0)),
            pl.BlockSpec((W, W), lambda n: (0, 0)),
            pl.BlockSpec((W, 2 * W), lambda n: (0, 0)),
            pl.BlockSpec(consts['bup'].shape, lambda n: (0, 0)),
        ],
        out_specs=pl.BlockSpec((1, Cout2H, 2 * W), lambda n: (n, 0, 0)),
        compiler_params=pltpu.CompilerParams(dimension_semantics=("parallel",)),
    )(x1r, x2r, consts['a1'], consts['b1'], consts['a2'], consts['b2'],
      consts['mneg'], consts['mpos'], consts['awt'], consts['bup'])

    return out.reshape(N, Cout, 2 * H, 2 * W)                  # free reshape to NCHW


# ----------------------------------------------------------------------------
# Parameter setup (eval-mode BatchNorm folded into the conv weights & bias)
# ----------------------------------------------------------------------------
def _make_conv_params(key, cin, cout):
    k = jax.random.split(key, 6)
    w_pt = jax.random.normal(k[0], (cout, cin, 3, 3), jnp.float32) * 0.1
    b_conv = jax.random.normal(k[1], (cout,), jnp.float32) * 0.05
    gamma = 1.0 + 0.1 * jax.random.normal(k[2], (cout,), jnp.float32)
    beta = 0.05 * jax.random.normal(k[3], (cout,), jnp.float32)
    mean = 0.1 * jax.random.normal(k[4], (cout,), jnp.float32)
    var = jnp.abs(jax.random.normal(k[5], (cout,), jnp.float32)) + 0.5
    eps = 1e-5
    scale = gamma / jnp.sqrt(var + eps)
    bias = (b_conv - mean) * scale + beta            # folded BN bias
    w_folded = w_pt * scale[:, None, None, None]     # fold BN scale into weights
    return dict(w_pt=w_pt, b_conv=b_conv, gamma=gamma, beta=beta, mean=mean,
                var=var, w_folded=w_folded, bias=bias)


# ----------------------------------------------------------------------------
# Pure-JAX reference for verification
# ----------------------------------------------------------------------------
def _ref_conv_bn_relu_nchw(x, p):
    y = lax.conv_general_dilated(
        x, p['w_pt'], window_strides=(1, 1), padding=((1, 1), (1, 1)),
        dimension_numbers=('NCHW', 'OIHW', 'NCHW'))
    y = y + p['b_conv'][None, :, None, None]
    y = (y - p['mean'][None, :, None, None]) / jnp.sqrt(
        p['var'][None, :, None, None] + 1e-5)
    y = y * p['gamma'][None, :, None, None] + p['beta'][None, :, None, None]
    return jnp.maximum(y, 0.0)


def _ref_upsample_nchw(x):
    N, C, H, W = x.shape
    Ho, Wo = 2 * H, 2 * W
    hs = jnp.arange(Ho, dtype=jnp.float32) * (H - 1) / (Ho - 1)
    ws = jnp.arange(Wo, dtype=jnp.float32) * (W - 1) / (Wo - 1)
    h0 = jnp.clip(jnp.floor(hs).astype(jnp.int32), 0, H - 2); h1 = h0 + 1
    w0 = jnp.clip(jnp.floor(ws).astype(jnp.int32), 0, W - 2); w1 = w0 + 1
    dh = (hs - h0.astype(jnp.float32))[None, None, :, None]
    dw = (ws - w0.astype(jnp.float32))[None, None, None, :]
    x00 = x[:, :, h0][:, :, :, w0]
    x01 = x[:, :, h0][:, :, :, w1]
    x10 = x[:, :, h1][:, :, :, w0]
    x11 = x[:, :, h1][:, :, :, w1]
    return (x00 * (1 - dh) * (1 - dw) + x01 * (1 - dh) * dw
            + x10 * dh * (1 - dw) + x11 * dh * dw)


def _ref_up_forward(x1, x2, p1, p2):
    x = jnp.concatenate([x2, x1], axis=1)
    h = _ref_conv_bn_relu_nchw(x, p1)
    h = _ref_conv_bn_relu_nchw(h, p2)
    return _ref_upsample_nchw(h)


# ----------------------------------------------------------------------------
if __name__ == "__main__":
    key = jax.random.PRNGKey(0)
    k_x1, k_x2, k_p1, k_p2 = jax.random.split(key, 4)

    # Up(in_channels=8, out_channels=4): x1 and x2 carry 4 channels each.
    N, C_half, H, W = 2, 4, 16, 16
    in_channels = 2 * C_half          # 8
    mid_channels = in_channels // 4   # 2
    out_channels = 4

    x1 = jax.random.normal(k_x1, (N, C_half, H, W), jnp.float32)
    x2 = jax.random.normal(k_x2, (N, C_half, H, W), jnp.float32)

    p1 = _make_conv_params(k_p1, in_channels, mid_channels)
    p2 = _make_conv_params(k_p2, mid_channels, out_channels)

    # Derived constants built ONCE (BN + vertical conv taps folded into weights,
    # separable upsample factors); up_forward is jitted so there is no per-call
    # host work or constant re-upload.
    consts = prepare_constants(p1, p2, H, W)

    out = jax.block_until_ready(up_forward(x1, x2, consts))
    assert out.shape == (N, out_channels, 2 * H, 2 * W), out.shape

    ref = jax.block_until_ready(_ref_up_forward(x1, x2, p1, p2))
    np.testing.assert_allclose(np.asarray(out), np.asarray(ref),
                               rtol=2e-4, atol=2e-4)

    print("KERNEL_OK")
</pallas_src>

<mosaic_0001>
module attributes {stable_mosaic.version = 11 : i64} {
  func.func @_up_fused_kernel(%arg0: i32, %arg1: memref<1x64x16xf32, #tpu.memory_space<vmem>>, %arg2: memref<1x64x16xf32, #tpu.memory_space<vmem>>, %arg3: memref<32x384xf32, #tpu.memory_space<vmem>>, %arg4: memref<32x1xf32, #tpu.memory_space<vmem>>, %arg5: memref<64x96xf32, #tpu.memory_space<vmem>>, %arg6: memref<64x1xf32, #tpu.memory_space<vmem>>, %arg7: memref<16x16xf32, #tpu.memory_space<vmem>>, %arg8: memref<16x16xf32, #tpu.memory_space<vmem>>, %arg9: memref<16x32xf32, #tpu.memory_space<vmem>>, %arg10: memref<128x64xf32, #tpu.memory_space<vmem>>, %arg11: memref<1x128x32xf32, #tpu.memory_space<vmem>>) attributes {dimension_semantics = [#tpu.dimension_semantics<parallel>], iteration_bounds = array<i64: 2>, scalar_prefetch = 0 : i64, scratch_operands = 0 : i64, tpu.core_type = #tpu.core_type<tc>, window_params = [{transform_indices = @transform_0, window_bounds = array<i64: 1, 64, 16>}, {transform_indices = @transform_1, window_bounds = array<i64: 1, 64, 16>}, {pipeline_mode = #tpu.pipeline_mode<synchronous>, transform_indices = @transform_2, window_bounds = array<i64: 32, 384>}, {pipeline_mode = #tpu.pipeline_mode<synchronous>, transform_indices = @transform_3, window_bounds = array<i64: 32, 1>}, {pipeline_mode = #tpu.pipeline_mode<synchronous>, transform_indices = @transform_4, window_bounds = array<i64: 64, 96>}, {pipeline_mode = #tpu.pipeline_mode<synchronous>, transform_indices = @transform_5, window_bounds = array<i64: 64, 1>}, {pipeline_mode = #tpu.pipeline_mode<synchronous>, transform_indices = @transform_6, window_bounds = array<i64: 16, 16>}, {pipeline_mode = #tpu.pipeline_mode<synchronous>, transform_indices = @transform_7, window_bounds = array<i64: 16, 16>}, {pipeline_mode = #tpu.pipeline_mode<synchronous>, transform_indices = @transform_8, window_bounds = array<i64: 16, 32>}, {pipeline_mode = #tpu.pipeline_mode<synchronous>, transform_indices = @transform_9, window_bounds = array<i64: 128, 64>}, {transform_indices = @transform_10, window_bounds = array<i64: 1, 128, 32>}]} {
    %c0 = arith.constant 0 : index
    %c0_0 = arith.constant 0 : index
    %0 = vector.load %arg7[%c0, %c0_0] : memref<16x16xf32, #tpu.memory_space<vmem>>, vector<16x16xf32>
    %c0_1 = arith.constant 0 : index
    %c0_2 = arith.constant 0 : index
    %1 = vector.load %arg8[%c0_1, %c0_2] : memref<16x16xf32, #tpu.memory_space<vmem>>, vector<16x16xf32>
    %c0_3 = arith.constant 0 : index
    %c0_4 = arith.constant 0 : index
    %c0_5 = arith.constant 0 : index
    %2 = vector.load %arg2[%c0_3, %c0_4, %c0_5] : memref<1x64x16xf32, #tpu.memory_space<vmem>>, vector<1x64x16xf32>
    %3 = vector.shape_cast %2 : vector<1x64x16xf32> to vector<64x16xf32>
    %c0_6 = arith.constant 0 : index
    %c0_7 = arith.constant 0 : index
    %c0_8 = arith.constant 0 : index
    %4 = vector.load %arg1[%c0_6, %c0_7, %c0_8] : memref<1x64x16xf32, #tpu.memory_space<vmem>>, vector<1x64x16xf32>
    %5 = vector.shape_cast %4 : vector<1x64x16xf32> to vector<64x16xf32>
    %6 = tpu.concatenate %3, %5 in 0 : vector<64x16xf32>, vector<64x16xf32> -> vector<128x16xf32>
    %cst = arith.constant dense<0.000000e+00> : vector<128x16xf32>
    %7 = tpu.matmul %6, %0, %cst {dimension_numbers = #tpu.dot_dimension_numbers<[1], [0], [0], [1], [0, 0, 1, 1], [], []>} : vector<128x16xf32>, vector<16x16xf32>, vector<128x16xf32> -> vector<128x16xf32>
    %cst_9 = arith.constant dense<0.000000e+00> : vector<128x16xf32>
    %8 = tpu.matmul %6, %1, %cst_9 {dimension_numbers = #tpu.dot_dimension_numbers<[1], [0], [0], [1], [0, 0, 1, 1], [], []>} : vector<128x16xf32>, vector<16x16xf32>, vector<128x16xf32> -> vector<128x16xf32>
    %9 = tpu.concatenate %7, %6, %8 in 0 : vector<128x16xf32>, vector<128x16xf32>, vector<128x16xf32> -> vector<384x16xf32>
    %c0_10 = arith.constant 0 : index
    %c0_11 = arith.constant 0 : index
    %10 = vector.load %arg3[%c0_10, %c0_11] : memref<32x384xf32, #tpu.memory_space<vmem>>, vector<32x384xf32>
    %cst_12 = arith.constant dense<0.000000e+00> : vector<32x16xf32>
    %11 = tpu.matmul %10, %9, %cst_12 {dimension_numbers = #tpu.dot_dimension_numbers<[1], [0], [0], [1], [0, 0, 1, 1], [], []>} : vector<32x384xf32>, vector<384x16xf32>, vector<32x16xf32> -> vector<32x16xf32>
    %c0_13 = arith.constant 0 : index
    %c0_14 = arith.constant 0 : index
    %12 = vector.load %arg4[%c0_13, %c0_14] : memref<32x1xf32, #tpu.memory_space<vmem>>, vector<32x1xf32>
    %13 = vector.broadcast %12 : vector<32x1xf32> to vector<32x16xf32>
    %14 = arith.addf %11, %13 : vector<32x16xf32>
    %cst_15 = arith.constant 0.000000e+00 : f32
    %15 = vector.broadcast %cst_15 : f32 to vector<32x16xf32>
    %16 = arith.maximumf %14, %15 : vector<32x16xf32>
    %cst_16 = arith.constant dense<0.000000e+00> : vector<32x16xf32>
    %17 = tpu.matmul %16, %0, %cst_16 {dimension_numbers = #tpu.dot_dimension_numbers<[1], [0], [0], [1], [0, 0, 1, 1], [], []>} : vector<32x16xf32>, vector<16x16xf32>, vector<32x16xf32> -> vector<32x16xf32>
    %cst_17 = arith.constant dense<0.000000e+00> : vector<32x16xf32>
    %18 = tpu.matmul %16, %1, %cst_17 {dimension_numbers = #tpu.dot_dimension_numbers<[1], [0], [0], [1], [0, 0, 1, 1], [], []>} : vector<32x16xf32>, vector<16x16xf32>, vector<32x16xf32> -> vector<32x16xf32>
    %19 = tpu.concatenate %17, %16, %18 in 0 : vector<32x16xf32>, vector<32x16xf32>, vector<32x16xf32> -> vector<96x16xf32>
    %c0_18 = arith.constant 0 : index
    %c0_19 = arith.constant 0 : index
    %20 = vector.load %arg5[%c0_18, %c0_19] : memref<64x96xf32, #tpu.memory_space<vmem>>, vector<64x96xf32>
    %cst_20 = arith.constant dense<0.000000e+00> : vector<64x16xf32>
    %21 = tpu.matmul %20, %19, %cst_20 {dimension_numbers = #tpu.dot_dimension_numbers<[1], [0], [0], [1], [0, 0, 1, 1], [], []>} : vector<64x96xf32>, vector<96x16xf32>, vector<64x16xf32> -> vector<64x16xf32>
    %c0_21 = arith.constant 0 : index
    %c0_22 = arith.constant 0 : index
    %22 = vector.load %arg6[%c0_21, %c0_22] : memref<64x1xf32, #tpu.memory_space<vmem>>, vector<64x1xf32>
    %23 = vector.broadcast %22 : vector<64x1xf32> to vector<64x16xf32>
    %24 = arith.addf %21, %23 : vector<64x16xf32>
    %cst_23 = arith.constant 0.000000e+00 : f32
    %25 = vector.broadcast %cst_23 : f32 to vector<64x16xf32>
    %26 = arith.maximumf %24, %25 : vector<64x16xf32>
    %c0_24 = arith.constant 0 : index
    %c0_25 = arith.constant 0 : index
    %27 = vector.load %arg9[%c0_24, %c0_25] : memref<16x32xf32, #tpu.memory_space<vmem>>, vector<16x32xf32>
    %cst_26 = arith.constant dense<0.000000e+00> : vector<64x32xf32>
    %28 = tpu.matmul %26, %27, %cst_26 {dimension_numbers = #tpu.dot_dimension_numbers<[1], [0], [0], [1], [0, 0, 1, 1], [], []>} : vector<64x16xf32>, vector<16x32xf32>, vector<64x32xf32> -> vector<64x32xf32>
    %c0_27 = arith.constant 0 : index
    %c0_28 = arith.constant 0 : index
    %29 = vector.load %arg10[%c0_27, %c0_28] : memref<128x64xf32, #tpu.memory_space<vmem>>, vector<128x64xf32>
    %cst_29 = arith.constant dense<0.000000e+00> : vector<128x32xf32>
    %30 = tpu.matmul %29, %28, %cst_29 {dimension_numbers = #tpu.dot_dimension_numbers<[1], [0], [0], [1], [0, 0, 1, 1], [], []>} : vector<128x64xf32>, vector<64x32xf32>, vector<128x32xf32> -> vector<128x32xf32>
    %c0_30 = arith.constant 0 : index
    %c0_31 = arith.constant 0 : index
    %c0_32 = arith.constant 0 : index
    %31 = vector.load %arg11[%c0_30, %c0_31, %c0_32] : memref<1x128x32xf32, #tpu.memory_space<vmem>>, vector<1x128x32xf32>
    %32 = vector.shape_cast %31 : vector<1x128x32xf32> to vector<128x32xf32>
    %33 = vector.shape_cast %30 : vector<128x32xf32> to vector<1x128x32xf32>
    tpu.vector_store %arg11[%c0_30, %c0_31, %c0_32], %33 {strides = array<i32>} : memref<1x128x32xf32, #tpu.memory_space<vmem>>, vector<1x128x32xf32>,
    return
  }
  func.func @transform_0(%arg0: i32) -> (i32, i32, i32) {
    %c0_i32 = arith.constant 0 : i32
    %c0_i32_0 = arith.constant 0 : i32
    %c0_i32_1 = arith.constant 0 : i32
    return %arg0, %c0_i32, %c0_i32_0 : i32, i32, i32
  }
  func.func @transform_1(%arg0: i32) -> (i32, i32, i32) {
    %c0_i32 = arith.constant 0 : i32
    %c0_i32_0 = arith.constant 0 : i32
    %c0_i32_1 = arith.constant 0 : i32
    return %arg0, %c0_i32, %c0_i32_0 : i32, i32, i32
  }
  func.func @transform_2(%arg0: i32) -> (i32, i32) {
    %c0_i32 = arith.constant 0 : i32
    %c0_i32_0 = arith.constant 0 : i32
    %c0_i32_1 = arith.constant 0 : i32
    return %c0_i32, %c0_i32_0 : i32, i32
  }
  func.func @transform_3(%arg0: i32) -> (i32, i32) {
    %c0_i32 = arith.constant 0 : i32
    %c0_i32_0 = arith.constant 0 : i32
    %c0_i32_1 = arith.constant 0 : i32
    return %c0_i32, %c0_i32_0 : i32, i32
  }
  func.func @transform_4(%arg0: i32) -> (i32, i32) {
    %c0_i32 = arith.constant 0 : i32
    %c0_i32_0 = arith.constant 0 : i32
    %c0_i32_1 = arith.constant 0 : i32
    return %c0_i32, %c0_i32_0 : i32, i32
  }
  func.func @transform_5(%arg0: i32) -> (i32, i32) {
    %c0_i32 = arith.constant 0 : i32
    %c0_i32_0 = arith.constant 0 : i32
    %c0_i32_1 = arith.constant 0 : i32
    return %c0_i32, %c0_i32_0 : i32, i32
  }
  func.func @transform_6(%arg0: i32) -> (i32, i32) {
    %c0_i32 = arith.constant 0 : i32
    %c0_i32_0 = arith.constant 0 : i32
    %c0_i32_1 = arith.constant 0 : i32
    return %c0_i32, %c0_i32_0 : i32, i32
  }
  func.func @transform_7(%arg0: i32) -> (i32, i32) {
    %c0_i32 = arith.constant 0 : i32
    %c0_i32_0 = arith.constant 0 : i32
    %c0_i32_1 = arith.constant 0 : i32
    return %c0_i32, %c0_i32_0 : i32, i32
  }
  func.func @transform_8(%arg0: i32) -> (i32, i32) {
    %c0_i32 = arith.constant 0 : i32
    %c0_i32_0 = arith.constant 0 : i32
    %c0_i32_1 = arith.constant 0 : i32
    return %c0_i32, %c0_i32_0 : i32, i32
  }
  func.func @transform_9(%arg0: i32) -> (i32, i32) {
    %c0_i32 = arith.constant 0 : i32
    %c0_i32_0 = arith.constant 0 : i32
    %c0_i32_1 = arith.constant 0 : i32
    return %c0_i32, %c0_i32_0 : i32, i32
  }
  func.func @transform_10(%arg0: i32) -> (i32, i32, i32) {
    %c0_i32 = arith.constant 0 : i32
    %c0_i32_0 = arith.constant 0 : i32
    %c0_i32_1 = arith.constant 0 : i32
    return %arg0, %c0_i32, %c0_i32_0 : i32, i32, i32
  }
}

</mosaic_0001>

<bundles_post_ra>
// kernel: up_forward.1
= control target key start
LH: loop header
LB: loop body
LE: loop exit
PB: predicated region body
PF: predicated region fallthrough
CT: control target
= control target key end

     0   :  { %s3430_s0 = inlined_call_operand.vmem [shape: f32[2,64,16], index: 0, kind: input, shape index: {}]   ;;  %s3431_s1 = inlined_call_operand.vmem [shape: f32[2,64,16], index: 1, kind: input, shape index: {}]   ;;  %s3432_s2 = inlined_call_operand.hbm [shape: f32[32,384], index: 2, kind: input, shape index: {}]   ;;  %s3433_s3 = inlined_call_operand.vmem [shape: f32[32,1], index: 3, kind: input, shape index: {}]   ;;  %s3434_s4 = inlined_call_operand.hbm [shape: f32[64,96], index: 4, kind: input, shape index: {}]   ;;  %s3435_s5 = inlined_call_operand.vmem [shape: f32[64,1], index: 5, kind: input, shape index: {}]   ;;  %s3436_s6 = inlined_call_operand.hbm [shape: f32[16,16], index: 6, kind: input, shape index: {}]   ;;  %s3437_s7 = inlined_call_operand.hbm [shape: f32[16,16], index: 7, kind: input, shape index: {}]   ;;  %s3438_s8 = inlined_call_operand.hbm [shape: f32[16,32], index: 8, kind: input, shape index: {}]   ;;  %s3439_s9 = inlined_call_operand.vmem [shape: f32[128,64], index: 9, kind: input, shape index: {}]   ;;  %s3440_s10 = inlined_call_operand.hbm [shape: f32[2,128,32], index: 10, kind: output, shape index: {}]  }
   0x1   :  { %3454 = sst [smem:[#allocation22_spill]] %s3434_s4 }
   0x2   :  { %3455 = sst [smem:[#allocation23_spill]] %s3437_s7 }
   0x3   :  { %15 = vsyncpa [#allocation3], 0 }
   0x4   :  { %16 = vsyncpa [#allocation6], 0 }
   0x5   :  { %17 = vsyncpa [#allocation9], 0 }
   0x6   :  { %18 = vsyncpa [#allocation4], 0 }
   0x7   :  { %20 = vsyncpa [#allocation4 + $0x1], 0  ;;  %s2878_s13 = smov 0   ;;  %s2880_s14 = smov 0  }
   0x8   :  { %s2882_s15 = smov 0   ;;  %s2884_s16 = smov 0  }
   0x9 LB: > { %3456 = sst [smem:[#allocation16_spill]] %s2796_s13  ;;  %s2899_s17 = sadd.s32 4294967295, %s2808_s16   ;;  %s2808_s16 = sphi %s2884_s16, %s3483_s16   ;;  %s2804_s15 = sphi %s2882_s15, %s3485_s15   ;;  %s2800_s14 = sphi %s2880_s14, %s3487_s14   ;;  %s2796_s13 = sphi %s2878_s13, %s3486_s13  }
   0xa   : > { %3457 = sst [smem:[#allocation17_spill]] %s2804_s15  ;;  %s1892_s18 = sadd.s32 4294967294, %s2808_s16  }
   0xb   : > { %3458 = sst [smem:[#allocation18_spill]] %s2808_s16  ;;  %s2903_s19 = sadd.s32 1, %s2808_s16  }
   0xc   : > { %3459 = sst [smem:[#allocation19_spill]] %s2903_s19  ;;  %s253_s20 = sadd.s32 1, %s2804_s15 }
   0xd   : > { %s250_s21 = ssub.s32 %s2808_s16, %s2903_s19  ;;  %p263_p0 = scmp.ne.s32.totalorder %s2804_s15, %s2800_s14 }
   0xe   : > { %p251_p1 = scmp.eq.s32.totalorder %s250_s21, 0  ;;  %p264_p2 = scmp.eq.s32.totalorder %s2899_s17, 1 }
   0xf   : > { %p269_p3 = scmp.ne.s32.totalorder %s2800_s14, %s2796_s13  ;;  %p270_p4 = scmp.eq.s32.totalorder %s1892_s18, 1 }
  0x10   : > { %s2914_s22 = scalar_select %p251_p1, %s2804_s15, %s253_s20  }
  0x11   : > { %p2916_p5 = por %p264_p2, %p263_p0  ;;  %p2920_p6 = por %p270_p4, %p269_p3 }
  0x12   : > { %3460 = sst [smem:[#allocation20_spill]] %s2914_s22  ;;  %p1893_p7 = scmp.ge.s32.totalorder %s2808_s16, 1 }
  0x13   : > { %s3461_s23 = scalar_select %p2916_p5, 1, 0 }
  0x14   : > { %s3462_s24 = scalar_select %p2920_p6, 1, 0 }
  0x15   : > { %p277_p8 = scmp.lt.s32.totalorder %s2808_s16, 3  ;;  %p3442_p9 = scmp.eq.s32.totalorder %s2899_s17, 0 }
  0x16   : > { %3463 = sst [smem:[#allocation21_spill]] %s3462_s24  ;;  %s2810_s26 = smov [#allocation5]  }
  0x17   : > { %p2927_p10 = pnand %p1893_p7, %p277_p8  ;;  %s305_s27 = sshll.u32 %s2810_s26, 4  ;;  %s2933_s27 = int_to_ptr.vmem [resolvable:$true] %s305_s27 }
  0x18   : > { %s2811_s29 = smov [#allocation8]   ;;  %s2812_s11 = smov [#allocation2]  }
  0x19   : > { %s3464_s25 = scalar_select %p2927_p10, 1, 0 }
  0x1a   : > { %p2517_p11 = pneg %p2927_p10  ;;  %s334_s30 = sshll.u32 %s2811_s29, 4  ;;  %s2941_s30 = int_to_ptr.vmem [resolvable:$true] %s334_s30 }
  0x1b   : > { %s2943_s12 = sshll.u32 %s2812_s11, 4  ;;  %s3466_s4 = sld [smem:[#allocation22_spill]]  ;;  %s290_s12 = int_to_ptr.vmem [resolvable:$true] %s2943_s12 }
  0x1c   : > { %p2937_p12 = pnand %p3442_p9, %p2517_p11 }
  0x1e   : > { %p2953_p0 = pneg %p2937_p12 }
  0x21   : > { %s2594_s21 = scalar_lea.hbm %s3466_s4, 1024 }
  0x22   : > { %p2595_p13 = scmp.ne.s32.totalorder %s3466_s4, %s2594_s21  ;;  %p2601_p3 = scmp.lt.u32.totalorder %s2594_s21, %s3466_s4 }
  0x24   : > { %p2597_p1 = pnand %p2953_p0, %p2595_p13 }
  0x26   : > { %p2598_p2 = pneg %p2597_p1 }
  0x28   : > { %p2603_p4 = pnand %p2601_p3, %p2598_p2 }
  0x2a   : > { %2606 = shalt.err (!%p2603_p4)
}
  0x2b   : > { %s2607_s22 = scalar_lea.vmem %s2933_s27, 1024  ;;  %p2615_p9 = scmp.lt.s32.totalorder %s2933_s27, %s2933_s27 }
  0x2c   : > { %p2608_p7 = scmp.ne.s32.totalorder %s2933_s27, %s2607_s22  ;;  %p2616_p6 = scmp.lt.s32.totalorder %s2607_s22, %s2607_s22 }
  0x2e   : > { %p2610_p8 = pnand %p2608_p7, %p2953_p0  ;;  %p2617_p13 = por %p2616_p6, %p2615_p9 }
  0x30   : > { %p2611_p11 = pneg %p2610_p8 }
  0x32   : > { %p2618_p1 = pnand %p2617_p13, %p2611_p11 }
  0x34   : > { %2621 = shalt.err (!%p2618_p1)
}
  0x35   : > { %s3450_s18 = smov 128   ;;  %s3452_s20 = smov 8  }
  0x36   : > { %2523 = dma.hbm_to_vmem [thread:$0]  (!%p2937_p12), %s3466_s4, 1024, %s2933_s27, [#allocation6], %s3450_s18, %s3450_s18, %s3452_s20  }
  0x37   : > { %s3468_s7 = sld [smem:[#allocation23_spill]] }
  0x3d   : > { %s2622_s22 = scalar_lea.hbm %s3468_s7, 256 }
  0x3e   : > { %p2623_p6 = scmp.ne.s32.totalorder %s3468_s7, %s2622_s22  ;;  %p2629_p3 = scmp.lt.u32.totalorder %s2622_s22, %s3468_s7 }
  0x40   : > { %p2625_p9 = pnand %p2623_p6, %p2953_p0 }
  0x42   : > { %p2626_p2 = pneg %p2625_p9 }
  0x44   : > { %p2631_p4 = pnand %p2629_p3, %p2626_p2 }
  0x46   : > { %2634 = shalt.err (!%p2631_p4)
}
  0x47   : > { %s2635_s27 = scalar_lea.vmem %s2941_s30, 256  ;;  %p2643_p13 = scmp.lt.s32.totalorder %s2941_s30, %s2941_s30 }
  0x48   : > { %p2636_p7 = scmp.ne.s32.totalorder %s2941_s30, %s2635_s27  ;;  %p2644_p1 = scmp.lt.s32.totalorder %s2635_s27, %s2635_s27 }
  0x4a   : > { %p2638_p8 = pnand %p2636_p7, %p2953_p0  ;;  %p2645_p6 = por %p2644_p1, %p2643_p13 }
  0x4c   : > { %p2639_p11 = pneg %p2638_p8 }
  0x4e   : > { %p2646_p9 = pnand %p2645_p6, %p2639_p11 }
  0x50   : > { %2649 = shalt.err (!%p2646_p9)
}
  0x51   : > { %2529 = dma.hbm_to_vmem [thread:$0]  (!%p2937_p12), %s3468_s7, 256, %s2941_s30, [#allocation9], %s3450_s18, %s3450_s18, %s3452_s20  }
  0x52   : > { %s2650_s21 = scalar_lea.hbm %s3432_s2, 1536 }
  0x53   : > { %p2651_p2 = scmp.ne.s32.totalorder %s3432_s2, %s2650_s21  ;;  %p2657_p7 = scmp.lt.u32.totalorder %s2650_s21, %s3432_s2 }
  0x55   : > { %p2653_p3 = pnand %p2651_p2, %p2953_p0 }
  0x57   : > { %p2654_p4 = pneg %p2653_p3 }
  0x59   : > { %p2659_p8 = pnand %p2657_p7, %p2654_p4 }
  0x5b   : > { %2662 = shalt.err (!%p2659_p8)
}
  0x5c   : > { %s2663_s27 = scalar_lea.vmem %s290_s12, 1536  ;;  %p2671_p6 = scmp.lt.s32.totalorder %s290_s12, %s290_s12 }
  0x5d   : > { %p2664_p11 = scmp.ne.s32.totalorder %s290_s12, %s2663_s27  ;;  %p2672_p9 = scmp.lt.s32.totalorder %s2663_s27, %s2663_s27 }
  0x5f   : > { %p2666_p13 = pnand %p2664_p11, %p2953_p0  ;;  %p2673_p5 = por %p2672_p9, %p2671_p6 }
  0x61   : > { %p2667_p1 = pneg %p2666_p13 }
  0x63   : > { %p2674_p10 = pnand %p2673_p5, %p2667_p1 }
  0x65   : > { %2677 = shalt.err (!%p2674_p10)
}
  0x66   : > { %s2815_s30 = smov 384   ;;  %s2816_s13 = smov 24  }
  0x67   : > { %2520 = dma.hbm_to_vmem [thread:$0]  (!%p2937_p12), %s3432_s2, 1536, %s290_s12, [#allocation3], %s2815_s30, %s2815_s30, %s2816_s13  }
  0x68   : > { %s2817_s24 = smov [#allocation7]   ;;  %s2818_s26 = smov [#allocation10]  }
  0x69   : > { %s321_s21 = sshll.u32 %s2817_s24, 4  ;;  %s347_s29 = sshll.u32 %s2818_s26, 4  ;;  %s322_s21 = int_to_ptr.vmem [resolvable:$true] %s321_s21  ;;  %s348_s29 = int_to_ptr.vmem [resolvable:$true] %s347_s29 }
  0x6a   : > { %s2678_s27 = scalar_lea.hbm %s3436_s6, 256 }
  0x6b   : > { %p2679_p5 = scmp.ne.s32.totalorder %s3436_s6, %s2678_s27  ;;  %p2685_p3 = scmp.lt.u32.totalorder %s2678_s27, %s3436_s6 }
  0x6d   : > { %p2681_p10 = pnand %p2679_p5, %p2953_p0 }
  0x6f   : > { %p2682_p2 = pneg %p2681_p10 }
  0x71   : > { %p2687_p4 = pnand %p2685_p3, %p2682_p2 }
  0x73   : > { %2690 = shalt.err (!%p2687_p4)
}
  0x74   : > { %s2691_s12 = scalar_lea.vmem %s322_s21, 256  ;;  %p2699_p13 = scmp.lt.s32.totalorder %s322_s21, %s322_s21 }
  0x75   : > { %p2692_p7 = scmp.ne.s32.totalorder %s322_s21, %s2691_s12  ;;  %p2700_p1 = scmp.lt.s32.totalorder %s2691_s12, %s2691_s12 }
  0x77   : > { %p2694_p8 = pnand %p2692_p7, %p2953_p0  ;;  %p2701_p6 = por %p2700_p1, %p2699_p13 }
  0x79   : > { %p2695_p11 = pneg %p2694_p8 }
  0x7b   : > { %p2702_p9 = pnand %p2701_p6, %p2695_p11 }
  0x7d   : > { %2705 = shalt.err (!%p2702_p9)
}
  0x7e   : > { %s3469_s18 = smov 8   ;;  %s3470_s20 = smov 128  }
  0x7f   : > { %2526 = dma.hbm_to_vmem [thread:$0]  (!%p2937_p12), %s3436_s6, 256, %s322_s21, [#allocation6], %s3470_s20, %s3470_s20, %s3469_s18  }
  0x80   : > { %s2706_s16 = scalar_lea.hbm %s3438_s8, 256 }
  0x81   : > { %p2707_p5 = scmp.ne.s32.totalorder %s3438_s8, %s2706_s16  ;;  %p2713_p3 = scmp.lt.u32.totalorder %s2706_s16, %s3438_s8 }
  0x83   : > { %p2709_p10 = pnand %p2707_p5, %p2953_p0 }
  0x85   : > { %p2710_p2 = pneg %p2709_p10 }
  0x87   : > { %p2715_p4 = pnand %p2713_p3, %p2710_p2 }
  0x89   : > { %2718 = shalt.err (!%p2715_p4)
}
  0x8a   : > { %s2719_s22 = scalar_lea.vmem %s348_s29, 256  ;;  %p2727_p13 = scmp.lt.s32.totalorder %s348_s29, %s348_s29 }
  0x8b   : > { %p2720_p7 = scmp.ne.s32.totalorder %s348_s29, %s2719_s22  ;;  %p2728_p1 = scmp.lt.s32.totalorder %s2719_s22, %s2719_s22 }
  0x8d   : > { %p2722_p8 = pnand %p2720_p7, %p2953_p0  ;;  %p2729_p6 = por %p2728_p1, %p2727_p13 }
  0x8f   : > { %p2723_p11 = pneg %p2722_p8 }
  0x91   : > { %p2730_p9 = pnand %p2729_p6, %p2723_p11 }
  0x93   : > { %2733 = shalt.err (!%p2730_p9)
}
  0x94   : > { %2532 = dma.hbm_to_vmem [thread:$0]  (!%p2937_p12), %s3438_s8, 256, %s348_s29, [#allocation9], %s3470_s20, %s3470_s20, %s3469_s18  }
  0x95   : > { %p3471_p5 = scmp.ne.s32.totalorder %s3464_s25, 0 }
  0x96   : > { %p3472_p0 = scmp.eq.s32.totalorder (!%p3471_p5), %s2899_s17, 0 }
  0x97   : > { %382 = sbr.rel (%p3471_p5) target bundleno = 1580 (0x62c), region = 60 }
  0x9e   : > { %2779 = dma.done.wait (%p3472_p0), [#allocation3], 1536   ;;  %p3473_p10 = pmov %p3472_p0 }
  0x9f   : > { %p3474_p2 = pmov %p3472_p0 }
  0xa0   : > { %2781 = vsyncadd (%p3473_p10), [#allocation3], 4294965760 }
  0xa1   : > { %2783 = dma.done.wait (%p3474_p2), [#allocation6], 1280   ;;  %p3475_p3 = pmov %p3472_p0 }
  0xa2   : > { %p3476_p4 = pmov %p3472_p0 }
  0xa3   : > { %2785 = vsyncadd (%p3475_p3), [#allocation6], 4294966016 }
  0xa4   : > { %2787 = dma.done.wait (%p3476_p4), [#allocation9], 512   ;;  %p3477_p12 = pmov %p3472_p0 }
  0xa5   : > { %p441_p7 = scmp.lt.s32.totalorder %s2899_s17, 1  ;;  %vm471_vm0 = vcmask 130048   ;;  %v451_v0 = vld [vmem:[#allocation7] sm:$0xff]  ;;  %v452_v1 = vld [vmem:[#allocation7 + $0x8] sm:$0xff]  ;;  %v453_v4 = vld [vmem:[#allocation8] sm:$0xff]  ;;  %v2819_v27 = vmov 0  }
  0xa6   : > { %2789 = vsyncadd (%p3477_p12), [#allocation9], 4294966784  ;;  %v3091_v3 = vpack.c.bf16 %v452_v1, %v451_v0  ;;  %v454_v5 = vld [vmem:[#allocation8 + $0x8] sm:$0xff]  ;;  %v811_v23 = vld [vmem:[#allocation2 + $0x8] sm:$0xff]  ;;  %2592 = vset.pattern.permute.xlu0 %v2819_v27  ;;  %2593 = vset.pattern.permute.xlu1 %v2819_v27  ;;  %vm1258_vm1 = vcmask 785408   ;;  %vm1543_vm2 = vcmask 523264  }
  0xa7   : > { %s3080_s15 = scalar_select %p441_p7, %s2899_s17, 1  ;;  %v3095_v6 = vpack.c.bf16 %v454_v5, %v453_v4  ;;  %v812_v24 = vld [vmem:[#allocation2 + $0x10] sm:$0xff]  ;;  %v822_v25 = vld [vmem:[%s3433_s3] sm:$0xff]  ;;  %v823_v28 = vld [vmem:[%s3433_s3 + $0x8] sm:$0xff]  ;;  %vm1737_vm3 = vcmask 261120  }
  0xa8   : > { %2364 = vmatprep.subr.bf16.mxu0 %v3091_v3  ;;  %v824_v26 = vld [vmem:[%s3433_s3 + $0x10] sm:$0xff]  ;;  %828 = vperm.xlu0 %2592, %v822_v25   ;;  %v825_v29 = vld [vmem:[%s3433_s3 + $0x18] sm:$0xff]  ;;  %v1210_v30 = vld [vmem:[%s3435_s5] sm:$0xff]  ;;  %s1990_s13 = sshll.u32 %s2899_s17, 11  ;;  %p3478_p11 = scmp.ne.s32.totalorder %s3461_s23, 0 }
  0xa9   : > { %s1988_s25 = sshll.u32 %s3080_s15, 6  ;;  %2366 = vmatpush3.bf16.msra.mxu0 %v3091_v3  ;;  %2368 = vmatprep.subr.bf16.mxu1 %v3095_v6  ;;  %v1211_v31 = vld [vmem:[%s3435_s5 + $0x8] sm:$0xff]  ;;  %v1212_v32 = vld [vmem:[%s3435_s5 + $0x10] sm:$0xff]  ;;  %v1213_v33 = vld [vmem:[%s3435_s5 + $0x18] sm:$0xff]  ;;  %s3379_s26 = scalar_lea.hbm %s3440_s10, %s1990_s13 }
  0xaa   : > { %s3088_s12 = scalar_lea.vmem %s3431_s1, %s1988_s25  ;;  %2370 = vmatpush3.bf16.msra.mxu1 %v3095_v6  ;;  %s445_s4 = scalar_lea.vmem %s3430_s0, %s1988_s25  ;;  %838 = vperm.xlu1 %2593, %v824_v26   ;;  %v1214_v34 = vld [vmem:[%s3435_s5 + $0x20] sm:$0xff]  ;;  %v1215_v35 = vld [vmem:[%s3435_s5 + $0x28] sm:$0xff]  ;;  %v1216_v36 = vld [vmem:[%s3435_s5 + $0x30] sm:$0xff] }
  0xab   : > { %v455_v2 = vld [vmem:[%s3088_s12] sm:$0xff]  ;;  %v456_v7 = vld [vmem:[%s3088_s12 + $0x8] sm:$0xff]  ;;  %v3103_v8 = vld [vmem:[%s3088_s12 + $0x10] sm:$0xff]  ;;  %s2820_s22 = smov [#allocation11]  }
  0xac   : > { %2161 = vmatprep.mubr.msk.f32.mxu0 %vm471_vm0, %v455_v2  ;;  %2189 = vmatprep.mubr.msk.f32.mxu1 %vm471_vm0, %v455_v2  ;;  %v3110_v9 = vld [vmem:[%s3088_s12 + $0x18] sm:$0xff]  ;;  %v3115_v10 = vld [vmem:[%s3088_s12 + $0x20] sm:$0xff]  ;;  %v3124_v11 = vld [vmem:[%s3088_s12 + $0x28] sm:$0xff]  ;;  %v2371_v22 = vpack.c.bf16 %v456_v7, %v455_v2  ;;  %s2738_s21 = sshll.u32 %s2820_s22, 4  ;;  %s2739_s21 = int_to_ptr.vmem [resolvable:$false] %s2738_s21 }
  0xad   : > { %2162 = vmatmul.mubr.msk.f32.vlgmr.msra.gmra.mrb[0].mxu0 %vm471_vm0, %v456_v7  ;;  %2190 = vmatmul.mubr.msk.f32.vlgmr.msra.gmra.mrb[0].mxu1 %vm471_vm0, %v456_v7  ;;  %v3129_v12 = vld [vmem:[%s3088_s12 + $0x30] sm:$0xff]  ;;  %v3143_v13 = vld [vmem:[%s3088_s12 + $0x38] sm:$0xff]  ;;  %v3147_v14 = vld [vmem:[%s445_s4] sm:$0xff]  ;;  %v2375_v41 = vpack.c.bf16 %v3110_v9, %v3103_v8  ;;  %v2379_v48 = vpack.c.bf16 %v3124_v11, %v3115_v10  ;;  %s2740_s27 = scalar_lea.vmem %s2739_s21, 4096 }
  0xae   : > { %2164 = vmatprep.mubr.msk.f32.mxu0 %vm471_vm0, %v3103_v8  ;;  %2192 = vmatprep.mubr.msk.f32.mxu1 %vm471_vm0, %v3103_v8  ;;  %v3155_v15 = vld [vmem:[%s445_s4 + $0x8] sm:$0xff]  ;;  %v3159_v16 = vld [vmem:[%s445_s4 + $0x10] sm:$0xff]  ;;  %v3167_v17 = vld [vmem:[%s445_s4 + $0x18] sm:$0xff]  ;;  %v2383_v55 = vpack.c.bf16 %v3143_v13, %v3129_v12 }
  0xaf   : > { %v3171_v18 = vld [vmem:[%s445_s4 + $0x20] sm:$0xff]  ;;  %v3179_v19 = vld [vmem:[%s445_s4 + $0x28] sm:$0xff]  ;;  %v3183_v20 = vld [vmem:[%s445_s4 + $0x30] sm:$0xff]  ;;  %2372 = vmatprep.subr.bf16.mxu0 %v2371_v22  ;;  %833 = vperm.xlu0 %2592, %v823_v28   ;;  %v2387_v62 = vpack.c.bf16 %v3155_v15, %v3147_v14  ;;  %v2391_v7 = vpack.c.bf16 %v3167_v17, %v3159_v16 }
  0xb0   : > { %v3191_v21 = vld [vmem:[%s445_s4 + $0x38] sm:$0xff]  ;;  %843 = vperm.xlu1 %2593, %v825_v29   ;;  %s438_s4 = sand.u32 1, %s2800_s14  }
  0xb1   : > { %2165 = vmatmul.mubr.msk.f32.gmra.mrb[2].mxu0 %vm471_vm0, %v3110_v9  ;;  %2193 = vmatmul.mubr.msk.f32.gmra.mrb[2].mxu1 %vm471_vm0, %v3110_v9  ;;  %v1217_v37 = vld [vmem:[%s3435_s5 + $0x38] sm:$0xff]  ;;  %v2399_v25 = vpack.c.bf16 %v3191_v21, %v3183_v20  ;;  %s1906_s7 = sshll.u32 %s438_s4, 7  ;;  %s3389_s17 = scalar_lea.sflag [#allocation4], %s438_s4 }
  0xb2   : > { %2167 = vmatprep.mubr.msk.f32.mxu0 %vm471_vm0, %v3115_v10  ;;  %2195 = vmatprep.mubr.msk.f32.mxu1 %vm471_vm0, %v3115_v10  ;;  %s3344_s30 = scalar_lea.vmem [#allocation11], %s1906_s7 }
  0xb3   : > { %1220 = vperm.xlu0 %2592, %v1210_v30   ;;  %s1768_s16 = sshll.u32 %s3344_s30, 4  ;;  %s3381_s16 = int_to_ptr.vmem [resolvable:$true] %s1768_s16 }
  0xb4   : > { %1225 = vperm.xlu1 %2593, %v1211_v31   ;;  %s2734_s11 = scalar_lea.vmem %s3381_s16, 2048  ;;  %p2741_p6 = scmp.lt.s32.totalorder %s3381_s16, %s2739_s21 }
  0xb5   : > { %2168 = vmatmul.mubr.msk.f32.gmra.mrb[4].mxu0 %vm471_vm0, %v3124_v11  ;;  %2196 = vmatmul.mubr.msk.f32.gmra.mrb[4].mxu1 %vm471_vm0, %v3124_v11  ;;  %p2735_p8 = scmp.ne.s32.totalorder %s3381_s16, %s2734_s11  ;;  %p2742_p9 = scmp.lt.s32.totalorder %s2740_s27, %s2734_s11 }
  0xb6   : > { %2170 = vmatprep.mubr.msk.f32.mxu0 %vm471_vm0, %v3129_v12  ;;  %2198 = vmatprep.mubr.msk.f32.mxu1 %vm471_vm0, %v3129_v12 }
  0xb7   : > { %1230 = vperm.xlu0 %2592, %v1212_v32   ;;  %p2736_p13 = pnand %p2735_p8, %p3478_p11  ;;  %p2743_p5 = por %p2742_p9, %p2741_p6 }
  0xb8   : > { %1235 = vperm.xlu1 %2593, %v1213_v33   ;;  %v810_v33 = vld [vmem:[#allocation2] sm:$0xff] }
  0xb9   : > { %2171 = vmatmul.mubr.msk.f32.gmra.mrb[6].mxu0 %vm471_vm0, %v3143_v13  ;;  %2199 = vmatmul.mubr.msk.f32.gmra.mrb[6].mxu1 %vm471_vm0, %v3143_v13  ;;  %p2737_p1 = pneg %p2736_p13 }
  0xba   : > { %2173 = vmatprep.mubr.msk.f32.mxu0 %vm471_vm0, %v3147_v14  ;;  %2201 = vmatprep.mubr.msk.f32.mxu1 %vm471_vm0, %v3147_v14  ;;  %v2395_v14 = vpack.c.bf16 %v3179_v19, %v3171_v18 }
  0xbb   : > { %1240 = vperm.xlu0 %2592, %v1214_v34   ;;  %v814_v34 = vld [vmem:[#allocation2 + $0x20] sm:$0xff]  ;;  %p2744_p0 = pnand %p2743_p5, %p2737_p1 }
  0xbc   : > { %1245 = vperm.xlu1 %2593, %v1215_v35   ;;  %v813_v35 = vld [vmem:[#allocation2 + $0x18] sm:$0xff] }
  0xbd   : > { %2174 = vmatmul.mubr.msk.f32.gmra.mrb[8].mxu0 %vm471_vm0, %v3155_v15  ;;  %2202 = vmatmul.mubr.msk.f32.gmra.mrb[8].mxu1 %vm471_vm0, %v3155_v15 }
  0xbe   : > { %2176 = vmatprep.mubr.msk.f32.mxu0 %vm471_vm0, %v3159_v16  ;;  %2204 = vmatprep.mubr.msk.f32.mxu1 %vm471_vm0, %v3159_v16 }
  0xbf   : > { %1250 = vperm.xlu0 %2592, %v1216_v36   ;;  %v817_v36 = vld [vmem:[#allocation2 + $0x38] sm:$0xff] }
  0xc0   : > { %1255 = vperm.xlu1 %2593, %v1217_v37   ;;  %v821_v37 = vld [vmem:[#allocation2 + $0x58] sm:$0xff] }
  0xc1   : > { %2177 = vmatmul.mubr.msk.f32.gmra.mrb[10].mxu0 %vm471_vm0, %v3167_v17  ;;  %2205 = vmatmul.mubr.msk.f32.gmra.mrb[10].mxu1 %vm471_vm0, %v3167_v17 }
  0xc2   : > { %2179 = vmatprep.mubr.msk.f32.mxu0 %vm471_vm0, %v3171_v18  ;;  %2207 = vmatprep.mubr.msk.f32.mxu1 %vm471_vm0, %v3171_v18 }
  0xc5   : > { %2180 = vmatmul.mubr.msk.f32.gmra.mrb[12].mxu0 %vm471_vm0, %v3179_v19  ;;  %2208 = vmatmul.mubr.msk.f32.gmra.mrb[12].mxu1 %vm471_vm0, %v3179_v19 }
  0xc6   : > { %2182 = vmatprep.mubr.msk.f32.mxu0 %vm471_vm0, %v3183_v20  ;;  %2210 = vmatprep.mubr.msk.f32.mxu1 %vm471_vm0, %v3183_v20  ;;  %v815_v20 = vld [vmem:[#allocation2 + $0x28] sm:$0xff] }
  0xc9   : > { %2183 = vmatmul.mubr.msk.f32.gmra.mrb[14].mxu0 %vm471_vm0, %v3191_v21  ;;  %2211 = vmatmul.mubr.msk.f32.gmra.mrb[14].mxu1 %vm471_vm0, %v3191_v21  ;;  %v818_v21 = vld [vmem:[#allocation2 + $0x40] sm:$0xff] }
  0xca   : > { %910 = vmatprep.mubr.f32.mxu0 %v811_v23  ;;  %2245 = vmatprep.mubr.f32.mxu1 %v812_v24 }
 0x180   : > { %v2163_v38 = vpop.f32.mrb[0].mxu0  ;;  %v2191_v40 = vpop.f32.mrb[0].mxu1 }
 0x181   : > { %v586_v39 = vpop.f32.mrb[1].mxu0  ;;  %v731_v43 = vpop.f32.mrb[1].mxu1 }
 0x182   : > { %v2373_v42 = vpack.c.bf16 %v2163_v38, %v586_v39  ;;  %v2403_v44 = vpack.c.bf16 %v2191_v40, %v731_v43  ;;  %v816_v38 = vld [vmem:[#allocation2 + $0x30] sm:$0xff]  ;;  %v819_v40 = vld [vmem:[#allocation2 + $0x48] sm:$0xff] }
 0x183   : > { %v820_v39 = vld [vmem:[#allocation2 + $0x50] sm:$0xff] }
 0x184   : > { %v2166_v45 = vpop.f32.mrb[2].mxu0  ;;  %2374 = vmatpush3.bf16.msra.mxu0 %v2373_v42  ;;  %v2194_v47 = vpop.f32.mrb[2].mxu1  ;;  %2404 = vmatprep.subr.bf16.mxu1 %v2403_v44 }
 0x185   : > { %v596_v46 = vpop.f32.mrb[3].mxu0  ;;  %2376 = vmatprep.subr.bf16.mxu0 %v2375_v41  ;;  %v741_v50 = vpop.f32.mrb[3].mxu1  ;;  %2406 = vmatpush3.bf16.msra.mxu1 %v2403_v44 }
 0x186   : > { %v2377_v49 = vpack.c.bf16 %v2166_v45, %v596_v46  ;;  %v2407_v51 = vpack.c.bf16 %v2194_v47, %v741_v50  ;;  %v829_v42 = vpop.permute.xlu0 %828 }
 0x188   : > { %v2169_v52 = vpop.f32.mrb[4].mxu0  ;;  %2378 = vmatpush3.bf16.msra.mxu0 %v2377_v49  ;;  %v2197_v54 = vpop.f32.mrb[4].mxu1  ;;  %2408 = vmatprep.subr.bf16.mxu1 %v2407_v51 }
 0x189   : > { %v606_v53 = vpop.f32.mrb[5].mxu0  ;;  %2380 = vmatprep.subr.bf16.mxu0 %v2379_v48  ;;  %v751_v57 = vpop.f32.mrb[5].mxu1  ;;  %2410 = vmatpush3.bf16.msra.mxu1 %v2407_v51 }
 0x18a   : > { %v2381_v56 = vpack.c.bf16 %v2169_v52, %v606_v53  ;;  %v2411_v58 = vpack.c.bf16 %v2197_v54, %v751_v57  ;;  %v834_v51 = vpop.permute.xlu0 %833 }
 0x18c   : > { %v2172_v59 = vpop.f32.mrb[6].mxu0  ;;  %2382 = vmatpush3.bf16.msra.mxu0 %v2381_v56  ;;  %v2200_v61 = vpop.f32.mrb[6].mxu1  ;;  %2412 = vmatprep.subr.bf16.mxu1 %v2411_v58 }
 0x18d   : > { %v616_v60 = vpop.f32.mrb[7].mxu0  ;;  %2384 = vmatprep.subr.bf16.mxu0 %v2383_v55  ;;  %v761_v0 = vpop.f32.mrb[7].mxu1  ;;  %2414 = vmatpush3.bf16.msra.mxu1 %v2411_v58 }
 0x18e   : > { %v2385_v63 = vpack.c.bf16 %v2172_v59, %v616_v60  ;;  %v2415_v1 = vpack.c.bf16 %v2200_v61, %v761_v0  ;;  %v839_v56 = vpop.permute.xlu1 %838 }
 0x190   : > { %v2175_v2 = vpop.f32.mrb[8].mxu0  ;;  %2386 = vmatpush3.bf16.msra.mxu0 %v2385_v63  ;;  %v2203_v5 = vpop.f32.mrb[8].mxu1  ;;  %2416 = vmatprep.subr.bf16.mxu1 %v2415_v1 }
 0x191   : > { %v626_v4 = vpop.f32.mrb[9].mxu0  ;;  %2388 = vmatprep.subr.bf16.mxu0 %v2387_v62  ;;  %v771_v9 = vpop.f32.mrb[9].mxu1  ;;  %2418 = vmatpush3.bf16.msra.mxu1 %v2415_v1 }
 0x192   : > { %v2389_v8 = vpack.c.bf16 %v2175_v2, %v626_v4  ;;  %v2419_v10 = vpack.c.bf16 %v2203_v5, %v771_v9  ;;  %v844_v4 = vpop.permute.xlu1 %843 }
 0x194   : > { %v2178_v11 = vpop.f32.mrb[10].mxu0  ;;  %2390 = vmatpush3.bf16.msra.mxu0 %v2389_v8  ;;  %v2206_v13 = vpop.f32.mrb[10].mxu1  ;;  %2420 = vmatprep.subr.bf16.mxu1 %v2419_v10 }
 0x195   : > { %v636_v12 = vpop.f32.mrb[11].mxu0  ;;  %2392 = vmatprep.subr.bf16.mxu0 %v2391_v7  ;;  %v781_v22 = vpop.f32.mrb[11].mxu1  ;;  %2422 = vmatpush3.bf16.msra.mxu1 %v2419_v10 }
 0x196   : > { %v2393_v15 = vpack.c.bf16 %v2178_v11, %v636_v12  ;;  %v2423_v23 = vpack.c.bf16 %v2206_v13, %v781_v22  ;;  %v1202_v11 = vld [vmem:[#allocation5] sm:$0xff]  ;;  %v1397_v13 = vld [vmem:[#allocation10 + $0x8] sm:$0xff] }
 0x197   : > { %v1396_v12 = vld [vmem:[#allocation10] sm:$0xff] }
 0x198   : > { %v2181_v24 = vpop.f32.mrb[12].mxu0  ;;  %2394 = vmatpush3.bf16.msra.mxu0 %v2393_v15  ;;  %v2209_v17 = vpop.f32.mrb[12].mxu1  ;;  %2424 = vmatprep.subr.bf16.mxu1 %v2423_v23 }
 0x199   : > { %v646_v16 = vpop.f32.mrb[13].mxu0  ;;  %2396 = vmatprep.subr.bf16.mxu0 %v2395_v14  ;;  %v791_v27 = vpop.f32.mrb[13].mxu1  ;;  %2426 = vmatpush3.bf16.msra.mxu1 %v2423_v23  ;;  %v2467_v14 = vpack.c.bf16 %v1397_v13, %v1396_v12 }
 0x19a   : > { %v2397_v26 = vpack.c.bf16 %v2181_v24, %v646_v16  ;;  %v2427_v28 = vpack.c.bf16 %v2209_v17, %v791_v27 }
 0x19c   : > { %v2184_v29 = vpop.f32.mrb[14].mxu0  ;;  %2398 = vmatpush3.bf16.msra.mxu0 %v2397_v26  ;;  %v2212_v19 = vpop.f32.mrb[14].mxu1  ;;  %2428 = vmatprep.subr.bf16.mxu1 %v2427_v28 }
 0x19d   : > { %v656_v18 = vpop.f32.mrb[15].mxu0  ;;  %2400 = vmatprep.subr.bf16.mxu0 %v2399_v25  ;;  %v801_v31 = vpop.f32.mrb[15].mxu1  ;;  %2430 = vmatpush3.bf16.msra.mxu1 %v2427_v28 }
 0x19e   : > { %v2401_v30 = vpack.c.bf16 %v2184_v29, %v656_v18  ;;  %v2431_v32 = vpack.c.bf16 %v2212_v19, %v801_v31  ;;  %v1203_v19 = vld [vmem:[#allocation5 + $0x8] sm:$0xff]  ;;  %v1205_v31 = vld [vmem:[#allocation5 + $0x18] sm:$0xff] }
 0x1a0   : > { %2402 = vmatpush3.bf16.msra.mxu0 %v2401_v30  ;;  %2432 = vmatprep.subr.bf16.mxu1 %v2431_v32  ;;  %v1204_v30 = vld [vmem:[#allocation5 + $0x10] sm:$0xff] }
 0x1a1   : > { %2440 = vmatprep.subr.bf16.mxu0 %v3095_v6  ;;  %2434 = vmatpush3.bf16.msra.mxu1 %v2431_v32  ;;  %v1206_v32 = vld [vmem:[#allocation5 + $0x20] sm:$0xff] }
 0x1a2   : > { %2436 = vmatprep.subr.bf16.mxu1 %v3091_v3 }
 0x1a3   : > { %911 = vmatmul.mubr.f32.vlgmr.msra.gmra.mrb[16].mxu0 %v810_v33  ;;  %v1207_v33 = vld [vmem:[#allocation5 + $0x28] sm:$0xff] }
 0x1a4   : > { %915 = vmatprep.mubr.f32.mxu0 %v814_v34  ;;  %2442 = vmatpush3.bf16.msra.mxu0 %v3095_v6  ;;  %v1208_v34 = vld [vmem:[#allocation5 + $0x30] sm:$0xff] }
 0x1a5   : > { %2246 = vmatmul.mubr.f32.vlgmr.msra.gmra.mrb[16].mxu1 %v815_v20  ;;  %2468 = vmatprep.subr.bf16.mxu0 %v2467_v14  ;;  %v1209_v20 = vld [vmem:[#allocation5 + $0x38] sm:$0xff] }
 0x1a6   : > { %2248 = vmatprep.mubr.f32.mxu1 %v818_v21  ;;  %2438 = vmatpush3.bf16.msra.mxu1 %v3091_v3  ;;  %v1226_v21 = vpop.permute.xlu1 %1225 }
 0x1a7   : > { %916 = vmatmul.mubr.f32.gmra.mrb[18].mxu0 %v813_v35  ;;  %v1221_v35 = vpop.permute.xlu0 %1220 }
 0x1a8   : > { %920 = vmatprep.mubr.f32.mxu0 %v817_v36 }
 0x1a9   : > { %2249 = vmatmul.mubr.f32.gmra.mrb[18].mxu1 %v821_v37 }
 0x1aa   : > { %v1236_v36 = vpop.permute.xlu1 %1235 }
 0x1ab   : > { %921 = vmatmul.mubr.f32.gmra.mrb[20].mxu0 %v816_v38  ;;  %v1231_v38 = vpop.permute.xlu0 %1230 }
 0x1ac   : > { %925 = vmatprep.mubr.f32.mxu0 %v820_v39 }
 0x1af   : > { %926 = vmatmul.mubr.f32.gmra.mrb[22].mxu0 %v819_v40 }
 0x276   : > { %v2059_v41 = vpop.f32.mrb[16].mxu0 }
 0x277   : > { %v2060_v43 = vpop.f32.mrb[17].mxu0 }
 0x278   : > { %v2061_v44 = vadd.f32 %v2060_v43, %v2059_v41  ;;  %v2247_v6 = vpop.f32.mrb[16].mxu1 }
 0x279   : > { %v997_v45 = vpop.f32.mrb[17].mxu1 }
 0x27a   : > { %v2062_v46 = vpop.f32.mrb[18].mxu0  ;;  %v913_v47 = vadd.f32 %v2061_v44, %v829_v42 }
 0x27b   : > { %v2063_v48 = vpop.f32.mrb[19].mxu0 }
 0x27c   : > { %v2064_v49 = vadd.f32 %v2063_v48, %v2062_v46  ;;  %v998_v3 = vadd.f32 %v997_v45, %v913_v47  ;;  %v2250_v50 = vpop.f32.mrb[18].mxu1  ;;  %v1246_v46 = vpop.permute.xlu1 %1245 }
 0x27d   : > { %v1007_v52 = vpop.f32.mrb[19].mxu1  ;;  %v1241_v48 = vpop.permute.xlu0 %1240 }
 0x27e   : > { %v918_v53 = vadd.f32 %v2064_v49, %v834_v51  ;;  %v1016_v54 = vmax.f32 %v998_v3, 0.0  ;;  %v2065_v55 = vpop.f32.mrb[20].mxu0 }
 0x27f   : > { %v2066_v57 = vpop.f32.mrb[21].mxu0 }
 0x280   : > { %v1003_v58 = vadd.f32 %v2247_v6, %v918_v53  ;;  %v2067_v59 = vadd.f32 %v2066_v57, %v2065_v55  ;;  %2255 = vmatprep.mubr.msk.f32.mxu1 %vm471_vm0, %v1016_v54  ;;  %2265 = vmatprep.mubr.msk.f32.mxu0 %vm471_vm0, %v1016_v54 }
 0x281   : > { %v1251_v57 = vpop.permute.xlu0 %1250 }
 0x282   : > { %v1017_v60 = vmax.f32 %v1003_v58, 0.0  ;;  %v2068_v61 = vpop.f32.mrb[22].mxu0  ;;  %v923_v62 = vadd.f32 %v2067_v59, %v839_v56 }
 0x283   : > { %v2069_v63 = vpop.f32.mrb[23].mxu0 }
 0x284   : > { %v2070_v0 = vadd.f32 %v2069_v63, %v2068_v61  ;;  %v1008_v1 = vadd.f32 %v1007_v52, %v923_v62  ;;  %2256 = vmatmul.mubr.msk.f32.vlgmr.msra.gmra.mrb[20].mxu1 %vm471_vm0, %v1017_v60  ;;  %2266 = vmatmul.mubr.msk.f32.vlgmr.msra.gmra.mrb[24].mxu0 %vm471_vm0, %v1017_v60  ;;  %v2451_v2 = vpack.c.bf16 %v1017_v60, %v1016_v54  ;;  %v1256_v54 = vpop.permute.xlu1 %1255 }
 0x285   : > { %2470 = vmatpush3.bf16.msra.mxu0 %v2467_v14 }
 0x286   : > { %v928_v5 = vadd.f32 %v2070_v0, %v844_v4  ;;  %v1018_v7 = vmax.f32 %v1008_v1, 0.0  ;;  %v1527_v0 = vld [vmem:[%s3439_s9] sm:$0xff]  ;;  %v1537_v1 = vld [vmem:[%s3439_s9 + $0x50] sm:$0xff] }
 0x288   : > { %v1013_v8 = vadd.f32 %v2250_v50, %v928_v5  ;;  %2258 = vmatprep.mubr.msk.f32.mxu1 %vm471_vm0, %v1018_v7  ;;  %2268 = vmatprep.mubr.msk.f32.mxu0 %vm471_vm0, %v1018_v7 }
 0x28a   : > { %v1019_v9 = vmax.f32 %v1013_v8, 0.0 }
 0x28c   : > { %2259 = vmatmul.mubr.msk.f32.gmra.mrb[22].mxu1 %vm471_vm0, %v1019_v9  ;;  %2269 = vmatmul.mubr.msk.f32.gmra.mrb[26].mxu0 %vm471_vm0, %v1019_v9  ;;  %v2455_v10 = vpack.c.bf16 %v1019_v9, %v1018_v7 }
 0x28d   : > { %2295 = vmatprep.mubr.msk.f32.mxu1 %vm1258_vm1, %v1202_v11 }
 0x357   : > { %v2257_v15 = vpop.f32.mrb[20].mxu1  ;;  %v2267_v22 = vpop.f32.mrb[24].mxu0 }
 0x358   : > { %v1098_v23 = vpop.f32.mrb[21].mxu1  ;;  %v1183_v24 = vpop.f32.mrb[25].mxu0 }
 0x359   : > { %v2443_v16 = vpack.c.bf16 %v2257_v15, %v1098_v23  ;;  %v2459_v17 = vpack.c.bf16 %v2267_v22, %v1183_v24  ;;  %v1528_v22 = vld [vmem:[%s3439_s9 + $0x8] sm:$0xff]  ;;  %v1538_v23 = vld [vmem:[%s3439_s9 + $0x58] sm:$0xff]  ;;  %v1529_v24 = vld [vmem:[%s3439_s9 + $0x10] sm:$0xff] }
 0x35b   : > { %2444 = vmatprep.subr.bf16.mxu1 %v2443_v16 }
 0x35c   : > { %2446 = vmatpush3.bf16.msra.mxu1 %v2443_v16  ;;  %v1539_v16 = vld [vmem:[%s3439_s9 + $0x60] sm:$0xff] }
 0x35f   : > { %v2260_v25 = vpop.f32.mrb[22].mxu1  ;;  %v2270_v26 = vpop.f32.mrb[26].mxu0 }
 0x360   : > { %v1108_v27 = vpop.f32.mrb[23].mxu1  ;;  %v1193_v28 = vpop.f32.mrb[27].mxu0 }
 0x361   : > { %v2447_v29 = vpack.c.bf16 %v2260_v25, %v1108_v27  ;;  %v2463_v18 = vpack.c.bf16 %v2270_v26, %v1193_v28  ;;  %v1540_v25 = vld [vmem:[%s3439_s9 + $0x68] sm:$0xff]  ;;  %v1531_v26 = vld [vmem:[%s3439_s9 + $0x20] sm:$0xff]  ;;  %v1541_v27 = vld [vmem:[%s3439_s9 + $0x70] sm:$0xff] }
 0x362   : > { %v1532_v28 = vld [vmem:[%s3439_s9 + $0x28] sm:$0xff] }
 0x363   : > { %2448 = vmatprep.subr.bf16.mxu1 %v2447_v29 }
 0x364   : > { %2450 = vmatpush3.bf16.msra.mxu1 %v2447_v29  ;;  %v1542_v29 = vld [vmem:[%s3439_s9 + $0x78] sm:$0xff] }
 0x365   : > { %2452 = vmatprep.subr.bf16.mxu1 %v2451_v2 }
 0x368   : > { %2454 = vmatpush3.bf16.msra.mxu1 %v2451_v2 }
 0x369   : > { %2456 = vmatprep.subr.bf16.mxu1 %v2455_v10 }
 0x36c   : > { %2458 = vmatpush3.bf16.msra.mxu1 %v2455_v10 }
 0x36d   : > { %2460 = vmatprep.subr.bf16.mxu1 %v2459_v17 }
 0x370   : > { %2462 = vmatpush3.bf16.msra.mxu1 %v2459_v17  ;;  %v1530_v17 = vld [vmem:[%s3439_s9 + $0x18] sm:$0xff] }
 0x371   : > { %2464 = vmatprep.subr.bf16.mxu1 %v2463_v18 }
 0x374   : > { %2466 = vmatpush3.bf16.msra.mxu1 %v2463_v18  ;;  %v1533_v18 = vld [vmem:[%s3439_s9 + $0x30] sm:$0xff] }
 0x377   : > { %2296 = vmatmul.mubr.msk.f32.vlgmr.msra.gmra.mrb[24].mxu1 %vm1258_vm1, %v1203_v19  ;;  %v1534_v19 = vld [vmem:[%s3439_s9 + $0x38] sm:$0xff] }
 0x378   : > { %2298 = vmatprep.mubr.msk.f32.mxu1 %vm1258_vm1, %v1204_v30  ;;  %v1535_v30 = vld [vmem:[%s3439_s9 + $0x40] sm:$0xff] }
 0x37b   : > { %2299 = vmatmul.mubr.msk.f32.gmra.mrb[26].mxu1 %vm1258_vm1, %v1205_v31  ;;  %v1536_v31 = vld [vmem:[%s3439_s9 + $0x48] sm:$0xff] }
 0x37c   : > { %2301 = vmatprep.mubr.msk.f32.mxu1 %vm1258_vm1, %v1206_v32 }
 0x37f   : > { %2302 = vmatmul.mubr.msk.f32.gmra.mrb[28].mxu1 %vm1258_vm1, %v1207_v33 }
 0x380   : > { %2304 = vmatprep.mubr.msk.f32.mxu1 %vm1258_vm1, %v1208_v34 }
 0x383   : > { %2305 = vmatmul.mubr.msk.f32.gmra.mrb[30].mxu1 %vm1258_vm1, %v1209_v20 }
 0x384   : > { %2354 = vmatprep.mubr.msk.f32.mxu1 %vm1543_vm2, %v1537_v1 }
 0x44a   : > { %v2297_v37 = vpop.f32.mrb[24].mxu1 }
 0x44b   : > { %v1355_v39 = vadd.f32 %v2297_v37, %v1226_v21  ;;  %v1349_v40 = vpop.f32.mrb[25].mxu1 }
 0x44c   : > { %v1350_v41 = vadd.f32 %v1349_v40, %v1221_v35 }
 0x44d   : > { %v1389_v44 = vmax.f32 %v1355_v39, 0.0 }
 0x44e   : > { %v1388_v42 = vmax.f32 %v1350_v41, 0.0  ;;  %v2300_v43 = vpop.f32.mrb[26].mxu1 }
 0x44f   : > { %v1365_v6 = vadd.f32 %v2300_v43, %v1236_v36  ;;  %v1359_v45 = vpop.f32.mrb[27].mxu1 }
 0x450   : > { %v1360_v47 = vadd.f32 %v1359_v45, %v1231_v38  ;;  %2311 = vmatprep.mubr.msk.f32.mxu0 %vm471_vm0, %v1388_v42 }
 0x451   : > { %2312 = vmatmul.mubr.msk.f32.vlgmr.msra.gmra.mrb[28].mxu0 %vm471_vm0, %v1389_v44  ;;  %v1391_v50 = vmax.f32 %v1365_v6, 0.0 }
 0x452   : > { %v1390_v49 = vmax.f32 %v1360_v47, 0.0  ;;  %v2303_v3 = vpop.f32.mrb[28].mxu1 }
 0x453   : > { %v1375_v51 = vadd.f32 %v2303_v3, %v1246_v46  ;;  %v1369_v52 = vpop.f32.mrb[29].mxu1 }
 0x454   : > { %v1370_v53 = vadd.f32 %v1369_v52, %v1241_v48  ;;  %2314 = vmatprep.mubr.msk.f32.mxu0 %vm471_vm0, %v1390_v49 }
 0x455   : > { %2315 = vmatmul.mubr.msk.f32.gmra.mrb[30].mxu0 %vm471_vm0, %v1391_v50  ;;  %v1393_v58 = vmax.f32 %v1375_v51, 0.0 }
 0x456   : > { %v1392_v55 = vmax.f32 %v1370_v53, 0.0  ;;  %v2306_v56 = vpop.f32.mrb[30].mxu1 }
 0x457   : > { %v1385_v59 = vadd.f32 %v2306_v56, %v1256_v54  ;;  %v1379_v60 = vpop.f32.mrb[31].mxu1 }
 0x458   : > { %v1380_v61 = vadd.f32 %v1379_v60, %v1251_v57  ;;  %2317 = vmatprep.mubr.msk.f32.mxu0 %vm471_vm0, %v1392_v55 }
 0x459   : > { %2318 = vmatmul.mubr.msk.f32.gmra.mrb[32].mxu0 %vm471_vm0, %v1393_v58  ;;  %v1395_v63 = vmax.f32 %v1385_v59, 0.0 }
 0x45a   : > { %v1394_v62 = vmax.f32 %v1380_v61, 0.0 }
 0x45c   : > { %2320 = vmatprep.mubr.msk.f32.mxu0 %vm471_vm0, %v1394_v62 }
 0x45d   : > { %2321 = vmatmul.mubr.msk.f32.gmra.mrb[34].mxu0 %vm471_vm0, %v1395_v63 }
 0x45e   : > { %2339 = vmatprep.mubr.msk.f32.mxu0 %vm1543_vm2, %v1527_v0 }
 0x524   : > { %v2313_v2 = vpop.f32.mrb[28].mxu0 }
 0x525   : > { %v1488_v4 = vpop.f32.mrb[29].mxu0 }
 0x526   : > { %v2471_v5 = vpack.c.bf16 %v2313_v2, %v1488_v4 }
 0x528   : > { %v2316_v7 = vpop.f32.mrb[30].mxu0  ;;  %2472 = vmatprep.subr.bf16.mxu0 %v2471_v5  ;;  %2487 = vmatprep.subr.bf16.mxu1 %v2471_v5 }
 0x529   : > { %v1498_v8 = vpop.f32.mrb[31].mxu0  ;;  %2474 = vmatpush3.bf16.msra.mxu0 %v2471_v5  ;;  %2491 = vmatpush3.bf16.msra.mxu1 %v2471_v5 }
 0x52a   : > { %v2475_v9 = vpack.c.bf16 %v2316_v7, %v1498_v8 }
 0x52c   : > { %v2319_v10 = vpop.f32.mrb[32].mxu0  ;;  %2476 = vmatprep.subr.bf16.mxu0 %v2475_v9  ;;  %2488 = vmatprep.subr.bf16.mxu1 %v2475_v9 }
 0x52d   : > { %v1508_v11 = vpop.f32.mrb[33].mxu0  ;;  %2478 = vmatpush3.bf16.msra.mxu0 %v2475_v9  ;;  %2492 = vmatpush3.bf16.msra.mxu1 %v2475_v9 }
 0x52e   : > { %v2479_v12 = vpack.c.bf16 %v2319_v10, %v1508_v11 }
 0x530   : > { %v2322_v13 = vpop.f32.mrb[34].mxu0  ;;  %2480 = vmatprep.subr.bf16.mxu0 %v2479_v12  ;;  %2489 = vmatprep.subr.bf16.mxu1 %v2479_v12 }
 0x531   : > { %v1518_v14 = vpop.f32.mrb[35].mxu0  ;;  %2482 = vmatpush3.bf16.msra.mxu0 %v2479_v12  ;;  %2493 = vmatpush3.bf16.msra.mxu1 %v2479_v12 }
 0x532   : > { %v2483_v15 = vpack.c.bf16 %v2322_v13, %v1518_v14 }
 0x534   : > { %2484 = vmatprep.subr.bf16.mxu0 %v2483_v15  ;;  %2490 = vmatprep.subr.bf16.mxu1 %v2483_v15 }
 0x535   : > { %2486 = vmatpush3.bf16.msra.mxu0 %v2483_v15  ;;  %2494 = vmatpush3.bf16.msra.mxu1 %v2483_v15 }
 0x538   : > { %2340 = vmatmul.mubr.msk.f32.vlgmr.msra.gmra.mrb[36].mxu0 %vm1543_vm2, %v1528_v22  ;;  %2355 = vmatmul.mubr.msk.f32.vlgmr.msra.gmra.mrb[32].mxu1 %vm1543_vm2, %v1538_v23 }
 0x539   : > { %2342 = vmatprep.mubr.msk.f32.mxu0 %vm1543_vm2, %v1529_v24  ;;  %2357 = vmatprep.mubr.msk.f32.mxu1 %vm1543_vm2, %v1539_v16 }
 0x53c   : > { %2343 = vmatmul.mubr.msk.f32.gmra.mrb[38].mxu0 %vm1543_vm2, %v1530_v17  ;;  %2358 = vmatmul.mubr.msk.f32.gmra.mrb[34].mxu1 %vm1543_vm2, %v1540_v25 }
 0x53d   : > { %2345 = vmatprep.mubr.msk.f32.mxu0 %vm1543_vm2, %v1531_v26  ;;  %2360 = vmatprep.mubr.msk.f32.mxu1 %vm1543_vm2, %v1541_v27 }
 0x540   : > { %2346 = vmatmul.mubr.msk.f32.gmra.mrb[40].mxu0 %vm1543_vm2, %v1532_v28  ;;  %2361 = vmatmul.mubr.msk.f32.gmra.mrb[36].mxu1 %vm1543_vm2, %v1542_v29 }
 0x541   : > { %2348 = vmatprep.mubr.msk.f32.mxu0 %vm1543_vm2, %v1533_v18 }
 0x544   : > { %2349 = vmatmul.mubr.msk.f32.gmra.mrb[42].mxu0 %vm1543_vm2, %v1534_v19 }
 0x545   : > { %2351 = vmatprep.mubr.msk.f32.mxu0 %vm1543_vm2, %v1535_v30 }
 0x548   : > { %2352 = vmatmul.mubr.msk.f32.gmra.mrb[44].mxu0 %vm1543_vm2, %v1536_v31 }
 0x60b   : > { %v2341_v32 = vpop.f32.mrb[36].mxu0  ;;  %v2356_v33 = vpop.f32.mrb[32].mxu1 }
 0x60c   : > { %1739 = vst.msk [vmem:[%s3344_s30 + $0x8] sm:$0xff] %vm1737_vm3, %v2341_v32  ;;  %v1658_v34 = vpop.f32.mrb[37].mxu0  ;;  %1749 = vst.msk [vmem:[%s3344_s30 + $0x58] sm:$0xff] %vm1737_vm3, %v2356_v33  ;;  %v1708_v20 = vpop.f32.mrb[33].mxu1 }
 0x60d   : > { %1738 = vst.msk [vmem:[%s3344_s30] sm:$0xff] %vm1737_vm3, %v1658_v34  ;;  %1748 = vst.msk [vmem:[%s3344_s30 + $0x50] sm:$0xff] %vm1737_vm3, %v1708_v20 }
 0x60f   : > { %v2344_v21 = vpop.f32.mrb[38].mxu0  ;;  %v2359_v35 = vpop.f32.mrb[34].mxu1 }
 0x610   : > { %1741 = vst.msk [vmem:[%s3344_s30 + $0x18] sm:$0xff] %vm1737_vm3, %v2344_v21  ;;  %v1668_v36 = vpop.f32.mrb[39].mxu0  ;;  %1751 = vst.msk [vmem:[%s3344_s30 + $0x68] sm:$0xff] %vm1737_vm3, %v2359_v35  ;;  %v1718_v37 = vpop.f32.mrb[35].mxu1 }
 0x611   : > { %1740 = vst.msk [vmem:[%s3344_s30 + $0x10] sm:$0xff] %vm1737_vm3, %v1668_v36  ;;  %1750 = vst.msk [vmem:[%s3344_s30 + $0x60] sm:$0xff] %vm1737_vm3, %v1718_v37 }
 0x613   : > { %v2347_v38 = vpop.f32.mrb[40].mxu0  ;;  %v2362_v39 = vpop.f32.mrb[36].mxu1 }
 0x614   : > { %1743 = vst.msk [vmem:[%s3344_s30 + $0x28] sm:$0xff] %vm1737_vm3, %v2347_v38  ;;  %v1678_v40 = vpop.f32.mrb[41].mxu0  ;;  %1753 = vst.msk [vmem:[%s3344_s30 + $0x78] sm:$0xff] %vm1737_vm3, %v2362_v39  ;;  %v1728_v41 = vpop.f32.mrb[37].mxu1 }
 0x615   : > { %1742 = vst.msk [vmem:[%s3344_s30 + $0x20] sm:$0xff] %vm1737_vm3, %v1678_v40  ;;  %1752 = vst.msk [vmem:[%s3344_s30 + $0x70] sm:$0xff] %vm1737_vm3, %v1728_v41 }
 0x617   : > { %v2350_v42 = vpop.f32.mrb[42].mxu0 }
 0x618   : > { %1745 = vst.msk [vmem:[%s3344_s30 + $0x38] sm:$0xff] %vm1737_vm3, %v2350_v42  ;;  %v1688_v43 = vpop.f32.mrb[43].mxu0 }
 0x619   : > { %1744 = vst.msk [vmem:[%s3344_s30 + $0x30] sm:$0xff] %vm1737_vm3, %v1688_v43 }
 0x61b   : > { %v2353_v44 = vpop.f32.mrb[44].mxu0 }
 0x61c   : > { %1747 = vst.msk [vmem:[%s3344_s30 + $0x48] sm:$0xff] %vm1737_vm3, %v2353_v44  ;;  %v1698_v6 = vpop.f32.mrb[45].mxu0 }
 0x61d   : > { %1746 = vst.msk [vmem:[%s3344_s30 + $0x40] sm:$0xff] %vm1737_vm3, %v1698_v6 }
 0x61e   : > { %2747 = shalt.err (!%p2744_p0)
}
 0x61f   : > { %s2748_s15 = scalar_lea.hbm %s3379_s26, 2048  ;;  %s2752_s29 = scalar_lea.hbm %s3440_s10, 4096 }
 0x620   : > { %p2749_p10 = scmp.ne.s32.totalorder %s3379_s26, %s2748_s15  ;;  %p2753_p4 = scmp.lt.u32.totalorder %s3379_s26, %s3440_s10 }
 0x621   : > { %p2754_p12 = scmp.lt.u32.totalorder %s2752_s29, %s2748_s15  ;;  %p2756_p8 = scmp.lt.u32.totalorder %s2748_s15, %s3379_s26 }
 0x622   : > { %p2750_p2 = pnand %p2749_p10, %p3478_p11 }
 0x623   : > { %p2755_p7 = por %p2754_p12, %p2753_p4 }
 0x624   : > { %p2751_p3 = pneg %p2750_p2 }
 0x625   : > { %p2757_p13 = por %p2756_p8, %p2755_p7 }
 0x627   : > { %p2758_p1 = pnand %p2757_p13, %p2751_p3 }
 0x629   : > { %2761 = shalt.err (!%p2758_p1)
}
 0x62a   : > { %s2821_s20 = smov 128   ;;  %s2822_s4 = smov 8  }
 0x62b   : > { %2515 = dma.vmem_to_hbm [thread:$0]  (%p3478_p11), %s3381_s16, 2048, %s3379_s26, %s3389_s17, %s2821_s20, %s2821_s20, %s2822_s4  }
 0x62c PF: > { %s3479_s7 = sld [smem:[#allocation18_spill]]  ;;  %s3480_s30 = sld [smem:[#allocation16_spill]] }
 0x62d   : > { %s3481_s13 = sld [smem:[#allocation21_spill]] }
 0x632   : > { %p2547_p6 = scmp.ge.s32.totalorder %s3479_s7, 2  ;;  %s1783_s19 = sand.u32 1, %s3480_s30  }
 0x633   : > { %p3482_p9 = scmp.ne.s32.totalorder %s3481_s13, 0  ;;  %s1784_s24 = scalar_lea.sflag [#allocation4], %s1783_s19 }
 0x635   : > { %p2534_p5 = pnand %p2547_p6, %p3482_p9 }
 0x637   : > { %2791 = dma.done.wait (!%p2534_p5), %s1784_s24, 2048  }
 0x638   : > { %2793 = vsyncadd (!%p2534_p5), %s1784_s24, 4294965248  ;;  %s3483_s16 = sld [smem:[#allocation19_spill]]  ;;  %s3484_s11 = sld [smem:[#allocation17_spill]] }
 0x639   : > { %s3485_s15 = sld [smem:[#allocation20_spill]]  ;;  %s3486_s13 = smov %s2800_s14 }
 0x63e   : > { %p23_p0 = scmp.ge.s32.totalorder %s3483_s16, 4   ;;  %s3487_s14 = smov %s3484_s11 }
 0x640   :  { %25 = sbr.rel (!%p23_p0) target bundleno = 9 (0x9), region = 119 }
 0x647   :  { %1789 = vsyncpa [#allocation3], 1 }
 0x648   :  { %1791 = vsyncpa [#allocation3 + $0x1], 1 }
 0x649   :  { %1792 = vsyncpa [#allocation6], 1 }
 0x64a   :  { %1793 = vsyncpa [#allocation9], 1 }
 0x64b   :  { %1794 = vsyncpa [#allocation4], 1 }
 0x64c   :  { %1796 = vsyncpa [#allocation4 + $0x1], 1 }

</bundles_post_ra>
